<compile_context>
chip_gen: v5e
topology: v5e:2x2
jax: 0.10.0
libtpu: 0.0.40
codegen_flags: <defaults>
</compile_context>

<pallas_src>
from functools import partial

import jax
import jax.numpy as jnp
from jax.experimental import pallas as pl
from jax.experimental.pallas import tpu as pltpu

_LANE = 128
_ROW_GRAN = 16                      # bf16 packs 2 rows/sublane -> clean row tile multiple
_HAS_BUFFERED = hasattr(pl, "Buffered")


def _round_up(v, m):
    return ((v + m - 1) // m) * m


def _vmem_capacity_bytes():
    try:
        info = pltpu.get_tpu_info()
        cap = getattr(info, "vmem_capacity_bytes", None)
        if cap:
            return int(cap)
    except Exception:
        pass
    return 64 * 1024 * 1024          # conservative (v7x-sized) fallback


def _spec(shape, index_map, buffers=None):
    """BlockSpec with optional N-deep buffering, gated by a construction-time check."""
    if buffers is not None and _HAS_BUFFERED:
        try:
            return pl.BlockSpec(shape, index_map, pipeline_mode=pl.Buffered(buffers))
        except TypeError:            # very old builds without pipeline_mode kwarg
            pass
    return pl.BlockSpec(shape, index_map)


def _mlp_kernel(x_ref, w1_ref, b1_ref, w2_ref, b2_ref, o_ref, acc_ref, *,
                compute_dtype, approximate_gelu):
    hk = pl.program_id(1)

    @pl.when(hk == 0)
    def _init():
        acc_ref[...] = jnp.zeros_like(acc_ref)

    # fc1 on this hidden-dim chunk: (tm, C_in) @ (C_in, th), f32 MXU accumulation.
    # x is cast to the compute dtype here (hides under the MXU) rather than on host.
    xt = x_ref[...].astype(compute_dtype)
    h = jnp.dot(xt, w1_ref[...], preferred_element_type=jnp.float32)
    h = h + b1_ref[...]
    # tanh GELU lowers to the EUP (separate VLIW slot); exact erf saturates the VALU
    # before the MXU on v6e/v7x for edgevit-sized channels.
    h = jax.nn.gelu(h, approximate=approximate_gelu)
    # fc2 partial product for this hidden chunk, accumulated in f32 scratch.
    acc_ref[...] += jnp.dot(h.astype(compute_dtype), w2_ref[...],
                            preferred_element_type=jnp.float32)

    @pl.when(hk == pl.num_programs(1) - 1)
    def _finalize():
        o_ref[...] = (acc_ref[...] + b2_ref[...]).astype(o_ref.dtype)


def _footprint_bytes(tile_m, tile_h, n_h, c_in, c_out, in_bytes, w_bytes, out_bytes):
    resident_weights = (n_h == 1) and _HAS_BUFFERED
    wmult = 1 if resident_weights else 2               # single-buffered when resident
    w_buf = wmult * (c_in * tile_h + tile_h * c_out) * w_bytes
    b_buf = wmult * (tile_h + c_out) * 4
    x_buf = 2 * tile_m * c_in * in_bytes                # double-buffered x tile
    o_buf = 2 * tile_m * c_out * out_bytes              # double-buffered out tile
    h_buf = 2 * tile_m * tile_h * 4                     # f32 pre/post-activation temps
    acc_buf = tile_m * c_out * 4
    return w_buf + b_buf + x_buf + o_buf + h_buf + acc_buf


def _select_tiling(M, c_in, H, c_out, in_bytes, w_bytes, out_bytes, budget, req_tile_m):
    H_p = _round_up(H, _LANE)

    tile_m = max(_ROW_GRAN, (int(req_tile_m) // _ROW_GRAN) * _ROW_GRAN)
    if M >= _ROW_GRAN:
        tile_m = min(tile_m, (M // _ROW_GRAN) * _ROW_GRAN)
    else:
        tile_m = _ROW_GRAN                      # single partial block (<16 rows)
    # v7x megacore: aim for >= 4 M-steps (2 per TensorCore) when M is big enough.
    if M >= 4 * _LANE:
        tile_m = min(tile_m, _round_up(pl.cdiv(M, 4), _ROW_GRAN))
    if tile_m >= 2 * _LANE:
        tile_m = (tile_m // _LANE) * _LANE      # keep MXU passes fully filled

    def fits(tm, th):
        return _footprint_bytes(tm, th, pl.cdiv(H_p, th), c_in, c_out,
                                in_bytes, w_bytes, out_bytes) <= budget

    tile_h = H_p
    # Shrink tile_m first (down to 256), then split the hidden dim, then tile_m again.
    while not fits(tile_m, tile_h) and tile_m > 256:
        tile_m = max(256, ((tile_m // 2) // _ROW_GRAN) * _ROW_GRAN)
    while not fits(tile_m, tile_h) and tile_h > _LANE:
        tile_h = max(_LANE, _round_up(tile_h // 2, _LANE))
    while not fits(tile_m, tile_h) and tile_m > _ROW_GRAN:
        tile_m = max(_ROW_GRAN, ((tile_m // 2) // _ROW_GRAN) * _ROW_GRAN)

    n_h = pl.cdiv(H_p, tile_h)
    return tile_m, tile_h, n_h


def mlp_pallas(x, w1, b1, w2, b2, *, tile_m=512,
               compute_dtype=jnp.bfloat16, approximate_gelu=True):
    """Fused fc1 -> GELU -> fc2.

    x: (..., C_in); w1: (C_in, H); b1: (H,); w2: (H, C_out); b2: (C_out,).
    Matmuls run in `compute_dtype` with f32 MXU accumulation; biases / GELU /
    accumulator stay f32.  approximate_gelu=True (tanh) deviates by <~3e-3 abs from
    torch.nn.GELU's exact-erf default (perf: GELU moves from the VALU to the EUP).
    """
    orig_dtype = x.dtype
    *lead, C_in = x.shape
    H = w1.shape[1]
    C_out = w2.shape[1]
    M = 1
    for d in lead:
        M *= int(d)

    in_bytes = jnp.dtype(x.dtype).itemsize
    w_bytes = jnp.dtype(compute_dtype).itemsize
    out_bytes = jnp.dtype(orig_dtype).itemsize

    cap = _vmem_capacity_bytes()
    budget = int(0.70 * cap)
    tile_m, tile_h, n_h = _select_tiling(M, C_in, H, C_out, in_bytes, w_bytes,
                                         out_bytes, budget, tile_m)
    H_pad = n_h * tile_h

    est = _footprint_bytes(tile_m, tile_h, n_h, C_in, C_out, in_bytes, w_bytes, out_bytes)
    vmem_limit = int(min(0.85 * cap, max(2 * est, 48 * 1024 * 1024)))

    # Zero-pad only the (small) weights/biases along the hidden dim: padded hidden
    # columns see bias 0 -> GELU(0)=0, and the padded w2 rows are zero, so padding
    # contributes exactly nothing.  Activations are neither padded nor pre-cast.
    x2 = x.reshape(M, C_in)
    w1p = jnp.pad(w1, ((0, 0), (0, H_pad - H))).astype(compute_dtype)
    b1p = jnp.pad(jnp.reshape(b1, (1, H)), ((0, 0), (0, H_pad - H))).astype(jnp.float32)
    w2p = jnp.pad(w2, ((0, H_pad - H), (0, 0))).astype(compute_dtype)
    b2p = jnp.reshape(b2, (1, C_out)).astype(jnp.float32)

    grid = (pl.cdiv(M, tile_m), n_h)
    weight_bufs = 1 if n_h == 1 else None    # resident weights -> single buffer

    kernel = partial(_mlp_kernel, compute_dtype=compute_dtype,
                     approximate_gelu=approximate_gelu)

    flops = 2 * M * (C_in * H + H * C_out)
    bytes_accessed = (M * C_in * in_bytes + M * C_out * out_bytes
                      + (C_in * H_pad + H_pad * C_out) * w_bytes + (H_pad + C_out) * 4)
    cost = pl.CostEstimate(flops=flops, transcendentals=M * H,
                           bytes_accessed=bytes_accessed)

    out2 = pl.pallas_call(
        kernel,
        out_shape=jax.ShapeDtypeStruct((M, C_out), orig_dtype),
        grid_spec=pltpu.PrefetchScalarGridSpec(
            num_scalar_prefetch=0,
            grid=grid,
            in_specs=[
                _spec((tile_m, C_in), lambda i, k: (i, 0)),                # x tile
                _spec((C_in, tile_h), lambda i, k: (0, k), weight_bufs),   # fc1 weight chunk
                _spec((1, tile_h), lambda i, k: (0, k), weight_bufs),      # fc1 bias chunk
                _spec((tile_h, C_out), lambda i, k: (k, 0), weight_bufs),  # fc2 weight chunk
                _spec((1, C_out), lambda i, k: (0, 0), weight_bufs),       # fc2 bias
            ],
            out_specs=pl.BlockSpec((tile_m, C_out), lambda i, k: (i, 0)),
            scratch_shapes=[pltpu.VMEM((tile_m, C_out), jnp.float32)],
        ),
        compiler_params=pltpu.CompilerParams(
            dimension_semantics=("parallel", "arbitrary"),
            vmem_limit_bytes=vmem_limit,
        ),
        cost_estimate=cost,
    )(x2, w1p, b1p, w2p, b2p)

    return out2.reshape(*lead, C_out)


def _mlp_ref(x, w1, b1, w2, b2, approximate_gelu):
    h = jnp.einsum("...c,ch->...h", x, w1) + jnp.reshape(b1, (-1,))
    h = jax.nn.gelu(h, approximate=approximate_gelu)
    return jnp.einsum("...h,ho->...o", h, w2) + jnp.reshape(b2, (-1,))


if __name__ == "__main__":
    B, N = 2, 8
    in_features, hidden_features, out_features = 4, 32, 4

    key = jax.random.PRNGKey(0)
    kx, k1, k2, k3, k4 = jax.random.split(key, 5)

    # nn.Linear-style init; weights kept as (in, out) so the kernel computes x @ W,
    # numerically identical to torch's x @ W.T with W stored (out, in).
    lim1 = 1.0 / float(in_features) ** 0.5
    lim2 = 1.0 / float(hidden_features) ** 0.5
    x = jax.random.normal(kx, (B, N, in_features), jnp.float32)
    w1 = jax.random.uniform(k1, (in_features, hidden_features), jnp.float32, -lim1, lim1)
    b1 = jax.random.uniform(k2, (hidden_features,), jnp.float32, -lim1, lim1)
    w2 = jax.random.uniform(k3, (hidden_features, out_features), jnp.float32, -lim2, lim2)
    b2 = jax.random.uniform(k4, (out_features,), jnp.float32, -lim2, lim2)

    out = mlp_pallas(x, w1, b1, w2, b2)
    out = jax.block_until_ready(out)
    assert out.shape == (B, N, out_features)

    # Reference with the same GELU variant; bf16 matmul inputs + f32 accumulation ->
    # loosened tolerance.  (tanh GELU itself deviates <~3e-3 abs from exact erf.)
    ref = _mlp_ref(x, w1, b1, w2, b2, approximate_gelu=True)
    err = float(jnp.max(jnp.abs(out.astype(jnp.float32) - ref)))
    assert jnp.allclose(out.astype(jnp.float32), ref, atol=2.5e-2, rtol=2.5e-2), err

    print("KERNEL_OK")
</pallas_src>

<mosaic_0001>
module attributes {stable_mosaic.version = 11 : i64} {
  func.func @_mlp_kernel(%arg0: i32, %arg1: i32, %arg2: memref<16x4xf32, #tpu.memory_space<vmem>>, %arg3: memref<4x128xbf16, #tpu.memory_space<vmem>>, %arg4: memref<1x128xf32, #tpu.memory_space<vmem>>, %arg5: memref<128x4xbf16, #tpu.memory_space<vmem>>, %arg6: memref<1x4xf32, #tpu.memory_space<vmem>>, %arg7: memref<16x4xf32, #tpu.memory_space<vmem>>, %arg8: memref<16x4xf32, #tpu.memory_space<vmem>>) attributes {dimension_semantics = [#tpu.dimension_semantics<parallel>, #tpu.dimension_semantics<arbitrary>], iteration_bounds = array<i64: 1, 1>, scalar_prefetch = 0 : i64, scratch_operands = 1 : i64, tpu.core_type = #tpu.core_type<tc>, window_params = [{transform_indices = @transform_0, window_bounds = array<i64: 16, 4>}, {pipeline_mode = #tpu.pipeline_mode<synchronous>, transform_indices = @transform_1, window_bounds = array<i64: 4, 128>}, {pipeline_mode = #tpu.pipeline_mode<synchronous>, transform_indices = @transform_2, window_bounds = array<i64: 1, 128>}, {pipeline_mode = #tpu.pipeline_mode<synchronous>, transform_indices = @transform_3, window_bounds = array<i64: 128, 4>}, {pipeline_mode = #tpu.pipeline_mode<synchronous>, transform_indices = @transform_4, window_bounds = array<i64: 1, 4>}, {transform_indices = @transform_5, window_bounds = array<i64: 16, 4>}]} {
    %c0_i32 = arith.constant 0 : i32
    %0 = arith.cmpi eq, %arg1, %c0_i32 : i32
    %1 = arith.extui %0 : i1 to i32
    %c0_i32_0 = arith.constant 0 : i32
    %2 = arith.cmpi ne, %1, %c0_i32_0 : i32
    scf.if %2 {
      %cst_19 = arith.constant 0.000000e+00 : f32
      %32 = vector.broadcast %cst_19 : f32 to vector<16x4xf32>
      %c0_20 = arith.constant 0 : index
      %c0_21 = arith.constant 0 : index
      %33 = vector.load %arg8[%c0_20, %c0_21] : memref<16x4xf32, #tpu.memory_space<vmem>>, vector<16x4xf32>
      tpu.vector_store %arg8[%c0_20, %c0_21], %32 {strides = array<i32>} : memref<16x4xf32, #tpu.memory_space<vmem>>, vector<16x4xf32>,
    } else {
    }
    %c0 = arith.constant 0 : index
    %c0_1 = arith.constant 0 : index
    %3 = vector.load %arg2[%c0, %c0_1] : memref<16x4xf32, #tpu.memory_space<vmem>>, vector<16x4xf32>
    %4 = arith.truncf %3 : vector<16x4xf32> to vector<16x4xbf16>
    %c0_2 = arith.constant 0 : index
    %c0_3 = arith.constant 0 : index
    %5 = vector.load %arg3[%c0_2, %c0_3] : memref<4x128xbf16, #tpu.memory_space<vmem>>, vector<4x128xbf16>
    %cst = arith.constant dense<0.000000e+00> : vector<16x128xf32>
    %6 = tpu.matmul %4, %5, %cst {dimension_numbers = #tpu.dot_dimension_numbers<[1], [0], [0], [1], [0, 0, 1, 1], [], []>} : vector<16x4xbf16>, vector<4x128xbf16>, vector<16x128xf32> -> vector<16x128xf32>
    %c0_4 = arith.constant 0 : index
    %c0_5 = arith.constant 0 : index
    %7 = vector.load %arg4[%c0_4, %c0_5] : memref<1x128xf32, #tpu.memory_space<vmem>>, vector<1x128xf32>
    %8 = vector.broadcast %7 : vector<1x128xf32> to vector<16x128xf32>
    %9 = arith.addf %6, %8 : vector<16x128xf32>
    %10 = arith.mulf %9, %9 : vector<16x128xf32>
    %11 = arith.mulf %9, %10 : vector<16x128xf32>
    %cst_6 = arith.constant 4.471500e-02 : f32
    %12 = vector.broadcast %cst_6 : f32 to vector<16x128xf32>
    %13 = arith.mulf %12, %11 : vector<16x128xf32>
    %14 = arith.addf %9, %13 : vector<16x128xf32>
    %cst_7 = arith.constant 0.797884583 : f32
    %15 = vector.broadcast %cst_7 : f32 to vector<16x128xf32>
    %16 = arith.mulf %15, %14 : vector<16x128xf32>
    %17 = math.tanh %16 : vector<16x128xf32>
    %cst_8 = arith.constant 1.000000e+00 : f32
    %18 = vector.broadcast %cst_8 : f32 to vector<16x128xf32>
    %19 = arith.addf %18, %17 : vector<16x128xf32>
    %cst_9 = arith.constant 5.000000e-01 : f32
    %20 = vector.broadcast %cst_9 : f32 to vector<16x128xf32>
    %21 = arith.mulf %20, %19 : vector<16x128xf32>
    %22 = arith.mulf %9, %21 : vector<16x128xf32>
    %c0_10 = arith.constant 0 : index
    %c0_11 = arith.constant 0 : index
    %23 = vector.load %arg8[%c0_10, %c0_11] : memref<16x4xf32, #tpu.memory_space<vmem>>, vector<16x4xf32>
    %24 = arith.truncf %22 : vector<16x128xf32> to vector<16x128xbf16>
    %c0_12 = arith.constant 0 : index
    %c0_13 = arith.constant 0 : index
    %25 = vector.load %arg5[%c0_12, %c0_13] : memref<128x4xbf16, #tpu.memory_space<vmem>>, vector<128x4xbf16>
    %cst_14 = arith.constant dense<0.000000e+00> : vector<16x4xf32>
    %26 = tpu.matmul %24, %25, %cst_14 {dimension_numbers = #tpu.dot_dimension_numbers<[1], [0], [0], [1], [0, 0, 1, 1], [], []>} : vector<16x128xbf16>, vector<128x4xbf16>, vector<16x4xf32> -> vector<16x4xf32>
    %27 = arith.addf %23, %26 : vector<16x4xf32>
    %c0_15 = arith.constant 0 : index
    %c0_16 = arith.constant 0 : index
    %28 = vector.load %arg8[%c0_15, %c0_16] : memref<16x4xf32, #tpu.memory_space<vmem>>, vector<16x4xf32>
    tpu.vector_store %arg8[%c0_15, %c0_16], %27 {strides = array<i32>} : memref<16x4xf32, #tpu.memory_space<vmem>>, vector<16x4xf32>,
    %c0_i32_17 = arith.constant 0 : i32
    %29 = arith.cmpi eq, %arg1, %c0_i32_17 : i32
    %30 = arith.extui %29 : i1 to i32
    %c0_i32_18 = arith.constant 0 : i32
    %31 = arith.cmpi ne, %30, %c0_i32_18 : i32
    scf.if %31 {
      %c0_19 = arith.constant 0 : index
      %c0_20 = arith.constant 0 : index
      %32 = vector.load %arg8[%c0_19, %c0_20] : memref<16x4xf32, #tpu.memory_space<vmem>>, vector<16x4xf32>
      %c0_21 = arith.constant 0 : index
      %c0_22 = arith.constant 0 : index
      %33 = vector.load %arg6[%c0_21, %c0_22] : memref<1x4xf32, #tpu.memory_space<vmem>>, vector<1x4xf32>
      %34 = vector.broadcast %33 : vector<1x4xf32> to vector<16x4xf32>
      %35 = arith.addf %32, %34 : vector<16x4xf32>
      %c0_23 = arith.constant 0 : index
      %c0_24 = arith.constant 0 : index
      %36 = vector.load %arg7[%c0_23, %c0_24] : memref<16x4xf32, #tpu.memory_space<vmem>>, vector<16x4xf32>
      tpu.vector_store %arg7[%c0_23, %c0_24], %35 {strides = array<i32>} : memref<16x4xf32, #tpu.memory_space<vmem>>, vector<16x4xf32>,
    } else {
    }
    return
  }
  func.func @transform_0(%arg0: i32, %arg1: i32) -> (i32, i32) {
    %c0_i32 = arith.constant 0 : i32
    %c0_i32_0 = arith.constant 0 : i32
    return %arg0, %c0_i32 : i32, i32
  }
  func.func @transform_1(%arg0: i32, %arg1: i32) -> (i32, i32) {
    %c0_i32 = arith.constant 0 : i32
    %c0_i32_0 = arith.constant 0 : i32
    return %c0_i32, %arg1 : i32, i32
  }
  func.func @transform_2(%arg0: i32, %arg1: i32) -> (i32, i32) {
    %c0_i32 = arith.constant 0 : i32
    %c0_i32_0 = arith.constant 0 : i32
    return %c0_i32, %arg1 : i32, i32
  }
  func.func @transform_3(%arg0: i32, %arg1: i32) -> (i32, i32) {
    %c0_i32 = arith.constant 0 : i32
    %c0_i32_0 = arith.constant 0 : i32
    return %arg1, %c0_i32 : i32, i32
  }
  func.func @transform_4(%arg0: i32, %arg1: i32) -> (i32, i32) {
    %c0_i32 = arith.constant 0 : i32
    %c0_i32_0 = arith.constant 0 : i32
    %c0_i32_1 = arith.constant 0 : i32
    return %c0_i32, %c0_i32_0 : i32, i32
  }
  func.func @transform_5(%arg0: i32, %arg1: i32) -> (i32, i32) {
    %c0_i32 = arith.constant 0 : i32
    %c0_i32_0 = arith.constant 0 : i32
    return %arg0, %c0_i32 : i32, i32
  }
}

</mosaic_0001>

<bundles_post_ra>
// kernel: tpu_custom_call.1
= control target key start
LH: loop header
LB: loop body
LE: loop exit
PB: predicated region body
PF: predicated region fallthrough
CT: control target
= control target key end

     0   :  { %vm40_vm0 = vcmask 1041408   ;;  %vm25_vm1 = vcmask 31744   ;;  %v226_v18 = vmov 0.0   ;;  %s309_s1 = inlined_call_operand.vmem [shape: bf16[4,128], index: 1, kind: input, shape index: {}]   ;;  %s310_s0 = inlined_call_operand.vmem [shape: f32[16,4], index: 0, kind: input, shape index: {}]   ;;  %s311_s2 = inlined_call_operand.vmem [shape: f32[1,128], index: 2, kind: input, shape index: {}]   ;;  %s312_s4 = inlined_call_operand.vmem [shape: f32[1,4], index: 4, kind: input, shape index: {}]   ;;  %s313_s3 = inlined_call_operand.vmem [shape: bf16[128,4], index: 3, kind: input, shape index: {}]   ;;  %s314_s5 = inlined_call_operand.vmem [shape: f32[16,4], index: 5, kind: output, shape index: {}]  }
   0x1   :  { %v31_v0 = vld [vmem:[%s309_s1] sm:$0x3]  ;;  %v29_v2 = vld [vmem:[%s310_s0 + $0x8] sm:$0xff]  ;;  %v218_v5 = vld [vmem:[%s313_s3 + $0x38] sm:$0xff]  ;;  %26 = vst.msk [vmem:[#allocation2] sm:$0xff] %vm25_vm1, %v226_v18 }
   0x2   :  { %v28_v1 = vld [vmem:[%s310_s0] sm:$0xff]  ;;  %v42_v3 = vsel %vm40_vm0, %v31_v0, 0  ;;  %143 = vmatpush.bf16.msra.mxu1 %v218_v5  ;;  %v217_v6 = vld [vmem:[%s313_s3 + $0x30] sm:$0xff]  ;;  %v216_v7 = vld [vmem:[%s313_s3 + $0x28] sm:$0xff]  ;;  %27 = vst.msk [vmem:[#allocation2 + $0x8] sm:$0xff] %vm25_vm1, %v226_v18 }
   0x3   :  { %v30_v4 = vpack.c.bf16 %v29_v2, %v28_v1  ;;  %51 = vmatpush.bf16.msra.mxu0 %v42_v3  ;;  %v215_v8 = vld [vmem:[%s313_s3 + $0x20] sm:$0xff]  ;;  %v214_v9 = vld [vmem:[%s313_s3 + $0x18] sm:$0xff]  ;;  %v213_v10 = vld [vmem:[%s313_s3 + $0x10] sm:$0xff] }
   0x4   :  { %v212_v11 = vld [vmem:[%s313_s3 + $0x8] sm:$0xff]  ;;  %v220_v12 = vld [vmem:[%s311_s2] ss:$0 sm:$0xff] }
   0x5   :  { %v211_v13 = vld [vmem:[%s313_s3] sm:$0xff] }
   0x6   :  { %178 = vmatmul.msk.bf16.vlgmr.msra.gmra.mxu0 %vm25_vm1, %v30_v4  ;;  %144 = vmatpush.bf16.msra.mxu1 %v217_v6  ;;  %v221_v42 = vld [vmem:[%s312_s4] ss:$0 sm:$0xff] }
   0x8   :  { %v76_v38 = vld [vmem:[#allocation2] sm:$0xff] }
   0x9   :  { %v77_v41 = vld [vmem:[#allocation2 + $0x8] sm:$0xff] }
   0xa   :  { %145 = vmatpush.bf16.msra.mxu1 %v216_v7 }
   0xe   :  { %146 = vmatpush.bf16.msra.mxu1 %v215_v8 }
  0x12   :  { %147 = vmatpush.bf16.msra.mxu1 %v214_v9 }
  0x16   :  { %148 = vmatpush.bf16.msra.mxu1 %v213_v10 }
  0x1a   :  { %149 = vmatpush.bf16.msra.mxu1 %v212_v11 }
  0x1e   :  { %150 = vmatpush.bf16.msra.mxu1 %v211_v13 }
  0x83   :  { %v53_v14 = vpop.f32.mrf.mxu0 }
  0x84   :  { %v54_v15 = vadd.f32 %v220_v12, %v53_v14 }
  0x86   :  { %v58_v16 = vmul.f32 %v54_v15, %v54_v15 }
  0x88   :  { %v60_v17 = vmul.f32 %v58_v16, %v54_v15 }
  0x8a   :  { %v62_v19 = vmul.f32 0.044715, %v60_v17 }
  0x8b   :  { %v55_v20 = vpop.f32.mrf.mxu0 }
  0x8c   :  { %v64_v21 = vadd.f32 %v62_v19, %v54_v15  ;;  %v56_v22 = vadd.f32 %v220_v12, %v55_v20 }
  0x8e   :  { %v59_v23 = vmul.f32 %v56_v22, %v56_v22  ;;  %v66_v24 = vmul.f32 0.7978846, %v64_v21 }
  0x90   :  { %v61_v25 = vmul.f32 %v59_v23, %v56_v22  ;;  %222 = vtanh.f32 %v66_v24 }
  0x92   :  { %v63_v26 = vmul.f32 0.044715, %v61_v25 }
  0x94   :  { %v65_v27 = vadd.f32 %v63_v26, %v56_v22 }
  0x96   :  { %v67_v28 = vmul.f32 0.7978846, %v65_v27  ;;  %v223_v29 = vpop.eup %222 }
  0x97   :  { %v70_v30 = vadd.f32 1.0, %v223_v29 }
  0x98   :  { %224 = vtanh.f32 %v67_v28 }
  0x99   :  { %v72_v33 = vmul.f32 0.5, %v70_v30 }
  0x9b   :  { %v74_v35 = vmul.f32 %v72_v33, %v54_v15 }
  0x9e   :  { %v225_v31 = vpop.eup %224 }
  0x9f   :  { %v71_v32 = vadd.f32 1.0, %v225_v31 }
  0xa1   :  { %v73_v34 = vmul.f32 0.5, %v71_v32 }
  0xa3   :  { %v75_v36 = vmul.f32 %v73_v34, %v56_v22 }
  0xa5   :  { %v78_v37 = vpack.c.bf16 %v75_v36, %v74_v35 }
  0xa7   :  { %151 = vmatmul.bf16.vlgmr.msra.gmra.mxu1 %v78_v37 }
 0x124   :  { %v152_v39 = vpop.f32.mrf.mxu1 }
 0x125   :  { %v157_v40 = vadd.f32 %v152_v39, %v76_v38 }
 0x127   :  { %159 = vst.msk [vmem:[#allocation2] sm:$0xff] %vm25_vm1, %v157_v40 }
 0x12c   :  { %v154_v43 = vpop.f32.mrf.mxu1 }
 0x12d   :  { %v158_v44 = vadd.f32 %v154_v43, %v77_v41 }
 0x12e   :  { %v164_v45 = vld [vmem:[#allocation2] sm:$0xff] }
 0x12f   :  { %v170_v46 = vadd.f32 %v221_v42, %v164_v45  ;;  %160 = vst.msk [vmem:[#allocation2 + $0x8] sm:$0xff] %vm25_vm1, %v158_v44 }
 0x131   :  { %172 = vst.msk [vmem:[%s314_s5] sm:$0xff] %vm25_vm1, %v170_v46 }
 0x136   :  { %v165_v47 = vld [vmem:[#allocation2 + $0x8] sm:$0xff] }
 0x137   :  { %v171_v48 = vadd.f32 %v221_v42, %v165_v47 }
 0x139   :  { %173 = vst.msk [vmem:[%s314_s5 + $0x8] sm:$0xff] %vm25_vm1, %v171_v48 }

</bundles_post_ra>
